<compile_context>
chip_gen: v5e
topology: v5e:2x2
jax: 0.10.0
libtpu: 0.0.40
codegen_flags: <defaults>
</compile_context>

<pallas_src>
import jax
import jax.numpy as jnp
from jax.experimental import pallas as pl
from jax.experimental.pallas import tpu as pltpu


_MAX_ROW_TILE = 32        # bound on the unrolled per-row loop
_MAX_BATCH_TILE = 512     # keep DMA tiles near the measured efficiency sweet spot
_MXU_MIN_BATCH = 128      # switch to the batched-dot MXU path at this TB


def _vmem_limits():
    """Return (block_budget_bytes, vmem_limit_bytes) for this TPU generation."""
    cap = 64 * 1024 * 1024            # conservative default: v7x per-TC VMEM
    try:
        cap = int(getattr(pltpu.get_tpu_info(), "vmem_capacity_bytes", cap))
    except Exception:                 # query unavailable (e.g. interpret mode)
        pass
    # ~48 MiB limit on v7x (64 MiB physical), ~96 MiB on v5e/v6e (128 MiB).
    vmem_limit = max(min((3 * cap) // 4, 100 * 1024 * 1024), 32 * 1024 * 1024)
    block_budget = max(vmem_limit - 8 * 1024 * 1024, 8 * 1024 * 1024)
    return block_budget, vmem_limit


def _sublane(dtype):
    # Packed sublane tile: 8 for 4-byte, 16 for 2-byte, 32 for 1-byte dtypes.
    return max(8, 32 // jnp.dtype(dtype).itemsize)


def _choose_tiles(B, H, W, O, dtype, block_budget):
    """Pick (TB, TH): divisors of (B, H) legal under the TPU tiling rules.

    Legality:
      * x block (TB, TH, W): TH is the sublane dim -> TH % sublane == 0 or TH == H;
        W is the lane dim and equals the full array dim (always legal).
      * weight block (TH, O, W): O and W equal their full array dims (legal).
      * flat out block (TB, TH*O): TH*O is the lane dim -> % 128 == 0 or == H*O;
        TB is the sublane dim -> TB % sublane == 0 or TB == B.
    Among legal tiles, take the largest whose double-buffered blocks plus
    in-kernel temporaries fit the VMEM block budget.
    """
    itemsize = jnp.dtype(dtype).itemsize
    sub = _sublane(dtype)

    def legal_th(th):
        return ((th == H) or (th % sub == 0)) and \
               ((th == H) or ((th * O) % 128 == 0))

    def legal_tb(tb):
        return (tb == B) or (tb % sub == 0)

    def working_set(tb, th):
        # Double-buffered pipeline blocks (weights, x, out) ...
        blocks = 2 * (th * O * W + tb * th * W + tb * th * O) * itemsize
        # ... plus the f32 in-kernel temporaries of the chosen compute path.
        if tb >= _MXU_MIN_BATCH:
            temps = 4 * (th * tb * O)            # batched dot_general result
        else:
            temps = 4 * (tb * O * W + tb * O)    # per-row product + row result
        return blocks + temps

    # NOTE: the `or [H]` / `or [B]` fallbacks (pathological shapes with no
    # legal small divisor) can exceed the budget; real shapes have legal tiles.
    th_cands = [t for t in range(1, min(H, _MAX_ROW_TILE) + 1)
                if H % t == 0 and legal_th(t)] or [H]
    tb_cands = [t for t in range(1, min(B, _MAX_BATCH_TILE) + 1)
                if B % t == 0 and legal_tb(t)] or [B]

    best = (min(tb_cands), min(th_cands))
    best_key = None
    for th in th_cands:
        for tb in tb_cands:
            if working_set(tb, th) > block_budget:
                continue
            key = (tb * th, tb)                  # prefer big tiles, batch first
            if best_key is None or key > best_key:
                best, best_key = (tb, th), key
    return best


def _rowwise_kernel(w_ref, x_ref, o_ref):
    # w_ref: (TH, O, W)    weight rows for this tile
    # x_ref: (TB, TH, W)   activations (native layout, native dtype)
    # o_ref: (TB, TH*O)    lane-dense flat output slab
    th, out_w, _ = w_ref.shape
    tb = x_ref.shape[0]

    if tb >= _MXU_MIN_BATCH:
        # MXU path: one dot_general batched over TH rows, contracting W,
        # f32 accumulation; native-dtype operands go straight to the MXU.
        out = jax.lax.dot_general(
            x_ref[...], w_ref[...],
            dimension_numbers=(((2,), (2,)), ((1,), (0,))),
            preferred_element_type=jnp.float32)              # (TH, TB, O)
        for t in range(th):
            o_ref[:, t * out_w:(t + 1) * out_w] = out[t].astype(o_ref.dtype)
    else:
        # Small-batch VPU path: broadcast-multiply in the input dtype and
        # reduce over W with f32 accumulation, one weight row at a time
        # (bounded unroll; only one per-row product is ever live in f32).
        x = x_ref[...]                                        # (TB, TH, W)
        w = w_ref[...]                                        # (TH, O, W)
        for t in range(th):
            prod = x[:, t:t + 1, :] * w[t:t + 1, :, :]        # (TB, O, W)
            row = jnp.sum(prod.astype(jnp.float32), axis=-1)  # (TB, O) f32 acc
            o_ref[:, t * out_w:(t + 1) * out_w] = row.astype(o_ref.dtype)


def rowwise_linear(x, weights):
    """x: (..., H, W), weights: (H, O, W) -> (..., H, O, 1)."""
    *lead, H, W = x.shape
    H_w, O, W_w = weights.shape
    assert H == H_w and W == W_w, (x.shape, weights.shape)

    # Flatten leading batch dims (contiguous reshape: free, no HBM pass).
    xb = x.reshape(-1, H, W)
    B = xb.shape[0]

    block_budget, vmem_limit = _vmem_limits()
    tb, th = _choose_tiles(B, H, W, O, x.dtype, block_budget)
    n_h, n_b = H // th, B // tb

    itemsize = jnp.dtype(x.dtype).itemsize
    cost = pl.CostEstimate(
        flops=2 * B * H * O * W,
        transcendentals=0,
        bytes_accessed=(H * O * W + B * H * W + B * H * O) * itemsize,
    )

    out_flat = pl.pallas_call(
        _rowwise_kernel,
        out_shape=jax.ShapeDtypeStruct((B, H * O), x.dtype),
        grid_spec=pltpu.PrefetchScalarGridSpec(
            num_scalar_prefetch=0,
            # h outer / b inner: weight block index is constant across the
            # inner batch axis, so its DMA is issued once per row tile and
            # both operand streams are read from HBM exactly once.
            grid=(n_h, n_b),
            in_specs=[
                pl.BlockSpec((th, O, W), lambda h, b: (h, 0, 0)),   # weights
                pl.BlockSpec((tb, th, W), lambda h, b: (b, h, 0)),  # x
            ],
            # Lane-dense flat output slab: (TB, TH*O), TH*O % 128 == 0 or full.
            out_specs=pl.BlockSpec((tb, th * O), lambda h, b: (b, h)),
        ),
        compiler_params=pltpu.CompilerParams(
            dimension_semantics=("parallel", "parallel"),  # megacore / v7x 2-TC
            vmem_limit_bytes=vmem_limit,
        ),
        cost_estimate=cost,
    )(weights, xb)

    # Free contiguous reshape back to the PyTorch convention (..., H, O, 1).
    return out_flat.reshape(*lead, H, O, 1)


if __name__ == "__main__":
    # Small shapes consistent with the module: batch=4, height=8, width=32, out_width=16.
    B, H, W, O = 4, 8, 32, 16

    key = jax.random.PRNGKey(0)
    x = jax.random.normal(key, (B, H, W), dtype=jnp.float32)

    # nn.Parameter(torch.ones(height, out_width, width))
    weights = jnp.ones((H, O, W), dtype=jnp.float32)

    out = jax.block_until_ready(rowwise_linear(x, weights))

    # Pure-JAX reference (same semantics as torch.matmul broadcast).
    ref = jnp.einsum("how,bhw->bho", weights, x)[..., None]
    assert out.shape == (B, H, O, 1), out.shape
    assert jnp.allclose(out, ref, atol=1e-5, rtol=1e-5), float(jnp.max(jnp.abs(out - ref)))

    print("KERNEL_OK")
</pallas_src>

<mosaic_0001>
module attributes {stable_mosaic.version = 11 : i64} {
  func.func @_rowwise_kernel(%arg0: i32, %arg1: i32, %arg2: memref<8x16x32xf32, #tpu.memory_space<vmem>>, %arg3: memref<4x8x32xf32, #tpu.memory_space<vmem>>, %arg4: memref<4x128xf32, #tpu.memory_space<vmem>>) attributes {dimension_semantics = [#tpu.dimension_semantics<parallel>, #tpu.dimension_semantics<parallel>], iteration_bounds = array<i64: 1, 1>, scalar_prefetch = 0 : i64, scratch_operands = 0 : i64, tpu.core_type = #tpu.core_type<tc>, window_params = [{transform_indices = @transform_0, window_bounds = array<i64: 8, 16, 32>}, {transform_indices = @transform_1, window_bounds = array<i64: 4, 8, 32>}, {transform_indices = @transform_2, window_bounds = array<i64: 4, 128>}]} {
    %c0 = arith.constant 0 : index
    %c0_0 = arith.constant 0 : index
    %c0_1 = arith.constant 0 : index
    %0 = vector.load %arg3[%c0, %c0_0, %c0_1] : memref<4x8x32xf32, #tpu.memory_space<vmem>>, vector<4x8x32xf32>
    %c0_2 = arith.constant 0 : index
    %c0_3 = arith.constant 0 : index
    %c0_4 = arith.constant 0 : index
    %1 = vector.load %arg2[%c0_2, %c0_3, %c0_4] : memref<8x16x32xf32, #tpu.memory_space<vmem>>, vector<8x16x32xf32>
    %2 = vector.extract_strided_slice %0 {offsets = [0, 0, 0], sizes = [4, 1, 32], strides = [1, 1, 1]} : vector<4x8x32xf32> to vector<4x1x32xf32>
    %3 = vector.extract_strided_slice %1 {offsets = [0, 0, 0], sizes = [1, 16, 32], strides = [1, 1, 1]} : vector<8x16x32xf32> to vector<1x16x32xf32>
    %4 = vector.broadcast %2 : vector<4x1x32xf32> to vector<4x16x32xf32>
    %5 = vector.broadcast %3 : vector<1x16x32xf32> to vector<4x16x32xf32>
    %6 = arith.mulf %4, %5 : vector<4x16x32xf32>
    %cst = arith.constant dense<0.000000e+00> : vector<4x16xf32>
    %7 = vector.multi_reduction <add>, %6, %cst [2] : vector<4x16x32xf32> to vector<4x16xf32>
    %c0_5 = arith.constant 0 : index
    %c0_6 = arith.constant 0 : index
    %8 = vector.load %arg4[%c0_5, %c0_6] : memref<4x128xf32, #tpu.memory_space<vmem>>, vector<4x16xf32>
    tpu.vector_store %arg4[%c0_5, %c0_6], %7 {strides = array<i32>} : memref<4x128xf32, #tpu.memory_space<vmem>>, vector<4x16xf32>,
    %9 = vector.extract_strided_slice %0 {offsets = [0, 1, 0], sizes = [4, 1, 32], strides = [1, 1, 1]} : vector<4x8x32xf32> to vector<4x1x32xf32>
    %10 = vector.extract_strided_slice %1 {offsets = [1, 0, 0], sizes = [1, 16, 32], strides = [1, 1, 1]} : vector<8x16x32xf32> to vector<1x16x32xf32>
    %11 = vector.broadcast %9 : vector<4x1x32xf32> to vector<4x16x32xf32>
    %12 = vector.broadcast %10 : vector<1x16x32xf32> to vector<4x16x32xf32>
    %13 = arith.mulf %11, %12 : vector<4x16x32xf32>
    %cst_7 = arith.constant dense<0.000000e+00> : vector<4x16xf32>
    %14 = vector.multi_reduction <add>, %13, %cst_7 [2] : vector<4x16x32xf32> to vector<4x16xf32>
    %c0_8 = arith.constant 0 : index
    %c16 = arith.constant 16 : index
    %15 = vector.load %arg4[%c0_8, %c16] : memref<4x128xf32, #tpu.memory_space<vmem>>, vector<4x16xf32>
    tpu.vector_store %arg4[%c0_8, %c16], %14 {strides = array<i32>} : memref<4x128xf32, #tpu.memory_space<vmem>>, vector<4x16xf32>,
    %16 = vector.extract_strided_slice %0 {offsets = [0, 2, 0], sizes = [4, 1, 32], strides = [1, 1, 1]} : vector<4x8x32xf32> to vector<4x1x32xf32>
    %17 = vector.extract_strided_slice %1 {offsets = [2, 0, 0], sizes = [1, 16, 32], strides = [1, 1, 1]} : vector<8x16x32xf32> to vector<1x16x32xf32>
    %18 = vector.broadcast %16 : vector<4x1x32xf32> to vector<4x16x32xf32>
    %19 = vector.broadcast %17 : vector<1x16x32xf32> to vector<4x16x32xf32>
    %20 = arith.mulf %18, %19 : vector<4x16x32xf32>
    %cst_9 = arith.constant dense<0.000000e+00> : vector<4x16xf32>
    %21 = vector.multi_reduction <add>, %20, %cst_9 [2] : vector<4x16x32xf32> to vector<4x16xf32>
    %c0_10 = arith.constant 0 : index
    %c32 = arith.constant 32 : index
    %22 = vector.load %arg4[%c0_10, %c32] : memref<4x128xf32, #tpu.memory_space<vmem>>, vector<4x16xf32>
    tpu.vector_store %arg4[%c0_10, %c32], %21 {strides = array<i32>} : memref<4x128xf32, #tpu.memory_space<vmem>>, vector<4x16xf32>,
    %23 = vector.extract_strided_slice %0 {offsets = [0, 3, 0], sizes = [4, 1, 32], strides = [1, 1, 1]} : vector<4x8x32xf32> to vector<4x1x32xf32>
    %24 = vector.extract_strided_slice %1 {offsets = [3, 0, 0], sizes = [1, 16, 32], strides = [1, 1, 1]} : vector<8x16x32xf32> to vector<1x16x32xf32>
    %25 = vector.broadcast %23 : vector<4x1x32xf32> to vector<4x16x32xf32>
    %26 = vector.broadcast %24 : vector<1x16x32xf32> to vector<4x16x32xf32>
    %27 = arith.mulf %25, %26 : vector<4x16x32xf32>
    %cst_11 = arith.constant dense<0.000000e+00> : vector<4x16xf32>
    %28 = vector.multi_reduction <add>, %27, %cst_11 [2] : vector<4x16x32xf32> to vector<4x16xf32>
    %c0_12 = arith.constant 0 : index
    %c48 = arith.constant 48 : index
    %29 = vector.load %arg4[%c0_12, %c48] : memref<4x128xf32, #tpu.memory_space<vmem>>, vector<4x16xf32>
    tpu.vector_store %arg4[%c0_12, %c48], %28 {strides = array<i32>} : memref<4x128xf32, #tpu.memory_space<vmem>>, vector<4x16xf32>,
    %30 = vector.extract_strided_slice %0 {offsets = [0, 4, 0], sizes = [4, 1, 32], strides = [1, 1, 1]} : vector<4x8x32xf32> to vector<4x1x32xf32>
    %31 = vector.extract_strided_slice %1 {offsets = [4, 0, 0], sizes = [1, 16, 32], strides = [1, 1, 1]} : vector<8x16x32xf32> to vector<1x16x32xf32>
    %32 = vector.broadcast %30 : vector<4x1x32xf32> to vector<4x16x32xf32>
    %33 = vector.broadcast %31 : vector<1x16x32xf32> to vector<4x16x32xf32>
    %34 = arith.mulf %32, %33 : vector<4x16x32xf32>
    %cst_13 = arith.constant dense<0.000000e+00> : vector<4x16xf32>
    %35 = vector.multi_reduction <add>, %34, %cst_13 [2] : vector<4x16x32xf32> to vector<4x16xf32>
    %c0_14 = arith.constant 0 : index
    %c64 = arith.constant 64 : index
    %36 = vector.load %arg4[%c0_14, %c64] : memref<4x128xf32, #tpu.memory_space<vmem>>, vector<4x16xf32>
    tpu.vector_store %arg4[%c0_14, %c64], %35 {strides = array<i32>} : memref<4x128xf32, #tpu.memory_space<vmem>>, vector<4x16xf32>,
    %37 = vector.extract_strided_slice %0 {offsets = [0, 5, 0], sizes = [4, 1, 32], strides = [1, 1, 1]} : vector<4x8x32xf32> to vector<4x1x32xf32>
    %38 = vector.extract_strided_slice %1 {offsets = [5, 0, 0], sizes = [1, 16, 32], strides = [1, 1, 1]} : vector<8x16x32xf32> to vector<1x16x32xf32>
    %39 = vector.broadcast %37 : vector<4x1x32xf32> to vector<4x16x32xf32>
    %40 = vector.broadcast %38 : vector<1x16x32xf32> to vector<4x16x32xf32>
    %41 = arith.mulf %39, %40 : vector<4x16x32xf32>
    %cst_15 = arith.constant dense<0.000000e+00> : vector<4x16xf32>
    %42 = vector.multi_reduction <add>, %41, %cst_15 [2] : vector<4x16x32xf32> to vector<4x16xf32>
    %c0_16 = arith.constant 0 : index
    %c80 = arith.constant 80 : index
    %43 = vector.load %arg4[%c0_16, %c80] : memref<4x128xf32, #tpu.memory_space<vmem>>, vector<4x16xf32>
    tpu.vector_store %arg4[%c0_16, %c80], %42 {strides = array<i32>} : memref<4x128xf32, #tpu.memory_space<vmem>>, vector<4x16xf32>,
    %44 = vector.extract_strided_slice %0 {offsets = [0, 6, 0], sizes = [4, 1, 32], strides = [1, 1, 1]} : vector<4x8x32xf32> to vector<4x1x32xf32>
    %45 = vector.extract_strided_slice %1 {offsets = [6, 0, 0], sizes = [1, 16, 32], strides = [1, 1, 1]} : vector<8x16x32xf32> to vector<1x16x32xf32>
    %46 = vector.broadcast %44 : vector<4x1x32xf32> to vector<4x16x32xf32>
    %47 = vector.broadcast %45 : vector<1x16x32xf32> to vector<4x16x32xf32>
    %48 = arith.mulf %46, %47 : vector<4x16x32xf32>
    %cst_17 = arith.constant dense<0.000000e+00> : vector<4x16xf32>
    %49 = vector.multi_reduction <add>, %48, %cst_17 [2] : vector<4x16x32xf32> to vector<4x16xf32>
    %c0_18 = arith.constant 0 : index
    %c96 = arith.constant 96 : index
    %50 = vector.load %arg4[%c0_18, %c96] : memref<4x128xf32, #tpu.memory_space<vmem>>, vector<4x16xf32>
    tpu.vector_store %arg4[%c0_18, %c96], %49 {strides = array<i32>} : memref<4x128xf32, #tpu.memory_space<vmem>>, vector<4x16xf32>,
    %51 = vector.extract_strided_slice %0 {offsets = [0, 7, 0], sizes = [4, 1, 32], strides = [1, 1, 1]} : vector<4x8x32xf32> to vector<4x1x32xf32>
    %52 = vector.extract_strided_slice %1 {offsets = [7, 0, 0], sizes = [1, 16, 32], strides = [1, 1, 1]} : vector<8x16x32xf32> to vector<1x16x32xf32>
    %53 = vector.broadcast %51 : vector<4x1x32xf32> to vector<4x16x32xf32>
    %54 = vector.broadcast %52 : vector<1x16x32xf32> to vector<4x16x32xf32>
    %55 = arith.mulf %53, %54 : vector<4x16x32xf32>
    %cst_19 = arith.constant dense<0.000000e+00> : vector<4x16xf32>
    %56 = vector.multi_reduction <add>, %55, %cst_19 [2] : vector<4x16x32xf32> to vector<4x16xf32>
    %c0_20 = arith.constant 0 : index
    %c112 = arith.constant 112 : index
    %57 = vector.load %arg4[%c0_20, %c112] : memref<4x128xf32, #tpu.memory_space<vmem>>, vector<4x16xf32>
    tpu.vector_store %arg4[%c0_20, %c112], %56 {strides = array<i32>} : memref<4x128xf32, #tpu.memory_space<vmem>>, vector<4x16xf32>,
    return
  }
  func.func @transform_0(%arg0: i32, %arg1: i32) -> (i32, i32, i32) {
    %c0_i32 = arith.constant 0 : i32
    %c0_i32_0 = arith.constant 0 : i32
    %c0_i32_1 = arith.constant 0 : i32
    return %arg0, %c0_i32, %c0_i32_0 : i32, i32, i32
  }
  func.func @transform_1(%arg0: i32, %arg1: i32) -> (i32, i32, i32) {
    %c0_i32 = arith.constant 0 : i32
    %c0_i32_0 = arith.constant 0 : i32
    return %arg1, %arg0, %c0_i32 : i32, i32, i32
  }
  func.func @transform_2(%arg0: i32, %arg1: i32) -> (i32, i32) {
    %c0_i32 = arith.constant 0 : i32
    return %arg1, %arg0 : i32, i32
  }
}

</mosaic_0001>

<bundles_post_ra>
// kernel: tpu_custom_call.1
= control target key start
LH: loop header
LB: loop body
LE: loop exit
PB: predicated region body
PF: predicated region fallthrough
CT: control target
= control target key end

     0   :  { %7 = vsyncpa [#allocation3], 0  ;;  %s897_s0 = inlined_call_operand.hbm [shape: f32[8,16,32], index: 0, kind: input, shape index: {}]   ;;  %s898_s1 = inlined_call_operand.hbm [shape: f32[4,8,32], index: 1, kind: input, shape index: {}]   ;;  %s899_s2 = inlined_call_operand.hbm [shape: f32[4,128], index: 2, kind: output, shape index: {}]  }
   0x1   :  { %8 = vsyncpa [#allocation6], 0 }
   0x2   :  { %9 = vsyncpa [#allocation4], 0  ;;  %s14_s11 = sshll.u32 %s897_s0, 4  ;;  %s690_s12 = smov [#allocation2]   ;;  %s15_s11 = int_to_ptr.hbm [resolvable:$true] %s14_s11 }
   0x3   :  { %s16_s13 = sshll.u32 %s690_s12, 4  ;;  %s27_s16 = sshll.u32 %s898_s1, 4  ;;  %s17_s13 = int_to_ptr.vmem [resolvable:$true] %s16_s13  ;;  %s28_s16 = int_to_ptr.hbm [resolvable:$true] %s27_s16 }
   0x4   :  { %s691_s17 = smov 128   ;;  %s692_s18 = smov 8  }
   0x5   :  { %22 = dma.hbm_to_vmem [thread:$0]  %s15_s11, 2048, %s17_s13, [#allocation3], %s691_s17, %s691_s17, %s692_s18  }
   0x6   :  { %s693_s19 = smov [#allocation5]  }
   0x7   :  { %s29_s20 = sshll.u32 %s693_s19, 4  ;;  %s30_s20 = int_to_ptr.vmem [resolvable:$true] %s29_s20 }
   0x8   :  { %35 = dma.hbm_to_vmem [thread:$0]  %s28_s16, 512, %s30_s20, [#allocation6], %s691_s17, %s691_s17, %s692_s18  }
   0x9   :  { %684 = dma.done.wait [#allocation3], 2048  }
   0xa   :  { %685 = vsyncadd [#allocation3], 4294965248 }
   0xb   :  { %686 = dma.done.wait [#allocation6], 512  }
   0xc   :  { %687 = vsyncadd [#allocation6], 4294966784  ;;  %v716_v0 = vld [vmem:[#allocation5 + $0x10] sm:$0xff]  ;;  %v48_v1 = vld [vmem:[#allocation2] sm:$0xff]  ;;  %vm76_vm0 = vcmask 261120   ;;  %vm114_vm1 = vcmask 130112  }
   0xd   :  { %v718_v2 = vld [vmem:[#allocation5 + $0x8] sm:$0xff]  ;;  %v66_v3 = vperm.slane %v716_v0, 0  ;;  %v722_v5 = vld [vmem:[#allocation5] sm:$0xff]  ;;  %v728_v17 = vld [vmem:[#allocation5 + $0x18] sm:$0xff]  ;;  %v136_v37 = vperm.slane %v716_v0, 1  ;;  %v201_v55 = vperm.slane %v716_v0, 2 }
   0xe   :  { %v65_v4 = vperm.slane %v718_v2, 0  ;;  %v64_v6 = vperm.slane %v722_v5, 0  ;;  %v49_v10 = vld [vmem:[#allocation2 + $0x8] sm:$0xff]  ;;  %v67_v20 = vperm.slane %v728_v17, 0  ;;  %v134_v21 = vperm.slane %v722_v5, 1  ;;  %v50_v23 = vld [vmem:[#allocation2 + $0x10] sm:$0xff] }
   0xf   :  { %v72_v7 = vmul.f32 %v66_v3, %v48_v1  ;;  %v73_v14 = vmul.f32 %v66_v3, %v49_v10  ;;  %v135_v29 = vperm.slane %v718_v2, 1  ;;  %v51_v31 = vld [vmem:[#allocation2 + $0x18] sm:$0xff]  ;;  %v137_v38 = vperm.slane %v728_v17, 1  ;;  %v52_v47 = vld [vmem:[#allocation2 + $0x20] sm:$0xff]  ;;  %v53_v48 = vld [vmem:[#allocation2 + $0x28] sm:$0xff]  ;;  %s694_s0 = smov [#allocation7]  }
  0x10   :  { %v70_v8 = vmul.f32 %v65_v4, %v48_v1  ;;  %v68_v9 = vmul.f32 %v64_v6, %v48_v1  ;;  %v71_v15 = vmul.f32 %v65_v4, %v49_v10  ;;  %v69_v16 = vmul.f32 %v64_v6, %v49_v10  ;;  %s594_s1 = sshll.u32 %s694_s0, 4  ;;  %s596_s23 = sshll.u32 %s899_s2, 4  ;;  %s595_s1 = int_to_ptr.vmem [resolvable:$true] %s594_s1  ;;  %s597_s23 = int_to_ptr.hbm [resolvable:$true] %s596_s23 }
  0x11   :  { %v89_v11 = vsel %vm76_vm0, %v72_v7, 0.0  ;;  %v92_v18 = vsel %vm76_vm0, %v73_v14, 0.0  ;;  %v75_v24 = vmul.f32 %v67_v20, %v49_v10  ;;  %v138_v25 = vmul.f32 %v134_v21, %v50_v23 }
  0x12   :  { %v83_v12 = vsel %vm76_vm0, %v70_v8, 0.0  ;;  %90 = vadd.xlane.f32.xlu2 %v89_v11  ;;  %v77_v13 = vsel %vm76_vm0, %v68_v9, 0.0  ;;  %v86_v19 = vsel %vm76_vm0, %v71_v15, 0.0  ;;  %v80_v22 = vsel %vm76_vm0, %v69_v16, 0.0  ;;  %v55_v11 = vld [vmem:[#allocation2 + $0x38] sm:$0xff] }
  0x13   :  { %84 = vadd.xlane.f32.xlu1 %v83_v12  ;;  %78 = vadd.xlane.f32.xlu0 %v77_v13  ;;  %v74_v26 = vmul.f32 %v67_v20, %v48_v1  ;;  %v98_v27 = vsel %vm76_vm0, %v75_v24, 0.0  ;;  %v146_v28 = vsel %vm76_vm0, %v138_v25, 0.0  ;;  %v140_v32 = vmul.f32 %v135_v29, %v50_v23  ;;  %v54_v12 = vld [vmem:[#allocation2 + $0x30] sm:$0xff] }
  0x14   :  { %v141_v33 = vmul.f32 %v135_v29, %v51_v31  ;;  %v139_v34 = vmul.f32 %v134_v21, %v51_v31  ;;  %v143_v40 = vmul.f32 %v136_v37, %v51_v31  ;;  %v144_v41 = vmul.f32 %v137_v38, %v50_v23  ;;  %v56_v29 = vld [vmem:[#allocation2 + $0x40] sm:$0xff] }
  0x15   :  { %v95_v30 = vsel %vm76_vm0, %v74_v26, 0.0  ;;  %v152_v35 = vsel %vm76_vm0, %v140_v32, 0.0  ;;  %v142_v42 = vmul.f32 %v136_v37, %v50_v23  ;;  %v199_v45 = vperm.slane %v722_v5, 2  ;;  %v57_v37 = vld [vmem:[#allocation2 + $0x48] sm:$0xff] }
  0x16   :  { %v155_v36 = vsel %vm76_vm0, %v141_v33, 0.0  ;;  %v149_v39 = vsel %vm76_vm0, %v139_v34, 0.0  ;;  %v161_v43 = vsel %vm76_vm0, %v143_v40, 0.0  ;;  %v164_v44 = vsel %vm76_vm0, %v144_v41, 0.0 }
  0x17   :  { %v158_v46 = vsel %vm76_vm0, %v142_v42, 0.0  ;;  %v203_v49 = vmul.f32 %v199_v45, %v52_v47  ;;  %v204_v50 = vmul.f32 %v199_v45, %v53_v48  ;;  %v145_v51 = vmul.f32 %v137_v38, %v51_v31 }
  0x18   :  { %v200_v54 = vperm.slane %v718_v2, 2  ;;  %v207_v58 = vmul.f32 %v201_v55, %v52_v47  ;;  %v202_v62 = vperm.slane %v728_v17, 2  ;;  %v208_v4 = vmul.f32 %v201_v55, %v53_v48 }
  0x19   :  { %v211_v52 = vsel %vm76_vm0, %v203_v49, 0.0  ;;  %v214_v53 = vsel %vm76_vm0, %v204_v50, 0.0  ;;  %v167_v56 = vsel %vm76_vm0, %v145_v51, 0.0  ;;  %v264_v8 = vperm.slane %v722_v5, 3 }
  0x1a   :  { %93 = vadd.xlane.f32.xlu2 %v92_v18  ;;  %v206_v57 = vmul.f32 %v200_v54, %v53_v48  ;;  %v205_v59 = vmul.f32 %v200_v54, %v52_v47  ;;  %v223_v61 = vsel %vm76_vm0, %v207_v58, 0.0  ;;  %v209_v1 = vmul.f32 %v202_v62, %v52_v47  ;;  %v59_v54 = vld [vmem:[#allocation2 + $0x58] sm:$0xff] }
  0x1b   :  { %87 = vadd.xlane.f32.xlu1 %v86_v19  ;;  %81 = vadd.xlane.f32.xlu0 %v80_v22  ;;  %v210_v3 = vmul.f32 %v202_v62, %v53_v48  ;;  %v265_v9 = vperm.slane %v718_v2, 3  ;;  %v226_v10 = vsel %vm76_vm0, %v208_v4, 0.0  ;;  %v269_v13 = vmul.f32 %v264_v8, %v55_v11 }
  0x1c   :  { %v220_v60 = vsel %vm76_vm0, %v206_v57, 0.0  ;;  %v217_v63 = vsel %vm76_vm0, %v205_v59, 0.0  ;;  %v229_v6 = vsel %vm76_vm0, %v209_v1, 0.0  ;;  %v268_v15 = vmul.f32 %v264_v8, %v54_v12 }
  0x1d   :  { %v232_v7 = vsel %vm76_vm0, %v210_v3, 0.0  ;;  %v270_v14 = vmul.f32 %v265_v9, %v54_v12  ;;  %v279_v16 = vsel %vm76_vm0, %v269_v13, 0.0  ;;  %v266_v19 = vperm.slane %v716_v0, 3 }
  0x1e   :  { %v276_v20 = vsel %vm76_vm0, %v268_v15, 0.0  ;;  %v271_v23 = vmul.f32 %v265_v9, %v55_v11  ;;  %v267_v26 = vperm.slane %v728_v17, 3  ;;  %v394_v51 = vperm.slane %v722_v5, 5 }
  0x1f   :  { %v282_v18 = vsel %vm76_vm0, %v270_v14, 0.0  ;;  %v272_v21 = vmul.f32 %v266_v19, %v54_v12  ;;  %v273_v22 = vmul.f32 %v266_v19, %v55_v11  ;;  %vm125_vm2 = vcmask 1041409  }
  0x20   :  { %v274_v32 = vmul.f32 %v267_v26, %v54_v12  ;;  %v109_v12 = vlaneseq  ;;  %vm127_vm3 = vcmask 1042434   ;;  %vm129_vm4 = vcmask 1043459  }
  0x21   :  { %v288_v24 = vsel %vm76_vm0, %v272_v21, 0.0  ;;  %v291_v25 = vsel %vm76_vm0, %v273_v22, 0.0  ;;  %v460_v21 = vperm.slane %v718_v2, 6  ;;  %vm132_vm5 = vcmask 125952  }
  0x22   :  { %147 = vadd.xlane.f32.xlu2 %v146_v28  ;;  %v285_v28 = vsel %vm76_vm0, %v271_v23, 0.0  ;;  %v800_v23 = vld [vmem:[#allocation2 + $0x60] sm:$0xff]  ;;  %vm182_vm6 = vcmask 261312   ;;  %vm197_vm7 = vcmask 257152   ;;  %vm247_vm8 = vcmask 392512  }
  0x23   :  { %99 = vadd.xlane.f32.xlu1 %v98_v27  ;;  %96 = vadd.xlane.f32.xlu0 %v95_v30  ;;  %v329_v27 = vperm.slane %v722_v5, 4  ;;  %v275_v30 = vmul.f32 %v267_v26, %v55_v11  ;;  %vm262_vm9 = vcmask 388352   ;;  %vm312_vm10 = vcmask 523712  }
  0x24   :  { %vm327_vm11 = vcmask 519552   ;;  %vm377_vm12 = vcmask 654912   ;;  %vm392_vm13 = vcmask 650752   ;;  %vm442_vm14 = vcmask 786112  }
  0x25   :  { %v333_v31 = vmul.f32 %v329_v27, %v56_v29  ;;  %v297_v33 = vsel %vm76_vm0, %v275_v30, 0.0  ;;  %v334_v40 = vmul.f32 %v329_v27, %v57_v37  ;;  %v465_v27 = vmul.f32 %v460_v21, %v800_v23 }
  0x26   :  { %vm457_vm15 = vcmask 781952  }
  0x27   :  { %v341_v34 = vsel %vm76_vm0, %v333_v31, 0.0  ;;  %v344_v45 = vsel %vm76_vm0, %v334_v40, 0.0 }
  0x2a   :  { %156 = vadd.xlane.f32.xlu2 %v155_v36  ;;  %v294_v36 = vsel %vm76_vm0, %v274_v32, 0.0 }
  0x2b   :  { %153 = vadd.xlane.f32.xlu1 %v152_v35  ;;  %150 = vadd.xlane.f32.xlu0 %v149_v39  ;;  %v330_v35 = vperm.slane %v718_v2, 4 }
  0x2d   :  { %v335_v38 = vmul.f32 %v330_v35, %v56_v29  ;;  %v336_v39 = vmul.f32 %v330_v35, %v57_v37 }
  0x2f   :  { %v347_v41 = vsel %vm76_vm0, %v335_v38, 0.0  ;;  %v350_v42 = vsel %vm76_vm0, %v336_v39, 0.0 }
  0x32   :  { %165 = vadd.xlane.f32.xlu2 %v164_v44  ;;  %v332_v44 = vperm.slane %v728_v17, 4 }
  0x33   :  { %162 = vadd.xlane.f32.xlu1 %v161_v43  ;;  %159 = vadd.xlane.f32.xlu0 %v158_v46  ;;  %v331_v43 = vperm.slane %v716_v0, 4 }
  0x34   :  { %v339_v47 = vmul.f32 %v332_v44, %v56_v29  ;;  %v340_v57 = vmul.f32 %v332_v44, %v57_v37 }
  0x35   :  { %v338_v46 = vmul.f32 %v331_v43, %v57_v37  ;;  %v337_v48 = vmul.f32 %v331_v43, %v56_v29  ;;  %v477_v37 = vsel %vm76_vm0, %v465_v27, 0.0 }
  0x36   :  { %v359_v50 = vsel %vm76_vm0, %v339_v47, 0.0  ;;  %v362_v62 = vsel %vm76_vm0, %v340_v57, 0.0  ;;  %v525_v57 = vperm.slane %v718_v2, 7 }
  0x37   :  { %v356_v49 = vsel %vm76_vm0, %v338_v46, 0.0 }
  0x3a   :  { %215 = vadd.xlane.f32.xlu2 %v214_v53  ;;  %v58_v53 = vld [vmem:[#allocation2 + $0x50] sm:$0xff] }
  0x3b   :  { %212 = vadd.xlane.f32.xlu1 %v211_v52  ;;  %168 = vadd.xlane.f32.xlu0 %v167_v56  ;;  %v353_v52 = vsel %vm76_vm0, %v337_v48, 0.0  ;;  %v398_v55 = vmul.f32 %v394_v51, %v58_v53  ;;  %v399_v56 = vmul.f32 %v394_v51, %v59_v54 }
  0x3d   :  { %v406_v58 = vsel %vm76_vm0, %v398_v55, 0.0  ;;  %v409_v59 = vsel %vm76_vm0, %v399_v56, 0.0  ;;  %v524_v56 = vperm.slane %v722_v5, 7 }
  0x42   :  { %224 = vadd.xlane.f32.xlu2 %v223_v61  ;;  %v396_v61 = vperm.slane %v716_v0, 5 }
  0x43   :  { %221 = vadd.xlane.f32.xlu1 %v220_v60  ;;  %218 = vadd.xlane.f32.xlu0 %v217_v63  ;;  %v395_v60 = vperm.slane %v718_v2, 5 }
  0x44   :  { %v402_v1 = vmul.f32 %v396_v61, %v58_v53  ;;  %v403_v11 = vmul.f32 %v396_v61, %v59_v54 }
  0x45   :  { %v401_v63 = vmul.f32 %v395_v60, %v59_v54  ;;  %v400_v3 = vmul.f32 %v395_v60, %v58_v53  ;;  %v62_v60 = vld [vmem:[#allocation2 + $0x70] sm:$0xff] }
  0x46   :  { %v421_v22 = vsel %vm76_vm0, %v403_v11, 0.0  ;;  %v528_v2 = vmul.f32 %v524_v56, %v62_v60 }
  0x47   :  { %v415_v4 = vsel %vm76_vm0, %v401_v63, 0.0  ;;  %v412_v8 = vsel %vm76_vm0, %v400_v3, 0.0 }
  0x4a   :  { %233 = vadd.xlane.f32.xlu2 %v232_v7  ;;  %v397_v7 = vperm.slane %v728_v17, 5 }
  0x4b   :  { %230 = vadd.xlane.f32.xlu1 %v229_v6  ;;  %227 = vadd.xlane.f32.xlu0 %v226_v10  ;;  %v418_v6 = vsel %vm76_vm0, %v402_v1, 0.0  ;;  %v530_v1 = vmul.f32 %v525_v57, %v62_v60 }
  0x4c   :  { %v404_v9 = vmul.f32 %v397_v7, %v58_v53  ;;  %v405_v10 = vmul.f32 %v397_v7, %v59_v54 }
  0x4e   :  { %v427_v19 = vsel %vm76_vm0, %v405_v10, 0.0  ;;  %v536_v10 = vsel %vm76_vm0, %v528_v2, 0.0 }
  0x52   :  { %283 = vadd.xlane.f32.xlu2 %v282_v18  ;;  %v424_v18 = vsel %vm76_vm0, %v404_v9, 0.0  ;;  %v462_v9 = vperm.slane %v728_v17, 6 }
  0x53   :  { %280 = vadd.xlane.f32.xlu1 %v279_v16  ;;  %277 = vadd.xlane.f32.xlu0 %v276_v20  ;;  %v459_v16 = vperm.slane %v722_v5, 6  ;;  %v796_v20 = vld [vmem:[#allocation2 + $0x68] sm:$0xff] }
  0x54   :  { %v466_v46 = vmul.f32 %v460_v21, %v796_v20  ;;  %v469_v11 = vmul.f32 %v462_v9, %v800_v23 }
  0x56   :  { %v489_v21 = vsel %vm76_vm0, %v469_v11, 0.0 }
  0x5a   :  { %292 = vadd.xlane.f32.xlu2 %v291_v25  ;;  %v464_v25 = vmul.f32 %v459_v16, %v796_v20 }
  0x5b   :  { %289 = vadd.xlane.f32.xlu1 %v288_v24  ;;  %286 = vadd.xlane.f32.xlu0 %v285_v28  ;;  %v802_v24 = vand.u32 127, %v109_v12  ;;  %v463_v28 = vmul.f32 %v459_v16, %v800_v23  ;;  %v470_v12 = vmul.f32 %v462_v9, %v796_v20 }
  0x5c   :  { %v474_v32 = vsel %vm76_vm0, %v464_v25, 0.0  ;;  %v526_v25 = vperm.slane %v716_v0, 7 }
  0x5d   :  { %v112_v26 = vadd.s32 4294967288, %v802_v24  ;;  %v471_v38 = vsel %vm76_vm0, %v463_v28, 0.0 }
  0x62   :  { %342 = vadd.xlane.f32.xlu2 %v341_v34 }
  0x63   :  { %298 = vadd.xlane.f32.xlu1 %v297_v33  ;;  %295 = vadd.xlane.f32.xlu0 %v294_v36  ;;  %v461_v33 = vperm.slane %v716_v0, 6 }
  0x6a   :  { %351 = vadd.xlane.f32.xlu2 %v350_v42  ;;  %v467_v42 = vmul.f32 %v461_v33, %v800_v23 }
  0x6b   :  { %348 = vadd.xlane.f32.xlu1 %v347_v41  ;;  %345 = vadd.xlane.f32.xlu0 %v344_v45  ;;  %v468_v45 = vmul.f32 %v461_v33, %v796_v20 }
  0x6c   :  { %v483_v53 = vsel %vm76_vm0, %v467_v42, 0.0 }
  0x6d   :  { %v486_v55 = vsel %vm76_vm0, %v468_v45, 0.0 }
  0x72   :  { %360 = vadd.xlane.f32.xlu2 %v359_v50 }
  0x73   :  { %357 = vadd.xlane.f32.xlu1 %v356_v49  ;;  %354 = vadd.xlane.f32.xlu0 %v353_v52 }
  0x7a   :  { %410 = vadd.xlane.f32.xlu2 %v409_v59  ;;  %v830_v59 = vld [vmem:[#allocation2 + $0x78] sm:$0xff] }
  0x7b   :  { %407 = vadd.xlane.f32.xlu1 %v406_v58  ;;  %363 = vadd.xlane.f32.xlu0 %v362_v62  ;;  %v480_v58 = vsel %vm76_vm0, %v466_v46, 0.0  ;;  %v529_v5 = vmul.f32 %v524_v56, %v830_v59 }
  0x7d   :  { %v539_v7 = vsel %vm76_vm0, %v529_v5, 0.0 }
  0x82   :  { %419 = vadd.xlane.f32.xlu2 %v418_v6 }
  0x83   :  { %416 = vadd.xlane.f32.xlu1 %v415_v4  ;;  %413 = vadd.xlane.f32.xlu0 %v412_v8  ;;  %v542_v8 = vsel %vm76_vm0, %v530_v1, 0.0 }
  0x85   :  { %v91_v13 = vpop.xlane.xlu2 %90 }
  0x86   :  { %v85_v14 = vpop.xlane.xlu1 %84  ;;  %v79_v15 = vpop.xlane.xlu0 %78  ;;  %v119_v40 = vperm.slane %v91_v13, %v802_v24  ;;  %v531_v13 = vmul.f32 %v525_v57, %v830_v59 }
  0x87   :  { %v116_v34 = vperm.slane %v85_v14, %v802_v24  ;;  %v111_v39 = vperm.slane %v79_v15, %v802_v24  ;;  %v178_v14 = vadd.s32 4294967280, %v802_v24  ;;  %v180_v15 = vadd.s32 4294967272, %v802_v24 }
  0x88   :  { %v545_v23 = vsel %vm76_vm0, %v531_v13, 0.0  ;;  %v310_v13 = vadd.s32 4294967240, %v802_v24 }
  0x8a   :  { %428 = vadd.xlane.f32.xlu2 %v427_v19 }
  0x8b   :  { %425 = vadd.xlane.f32.xlu1 %v424_v18  ;;  %422 = vadd.xlane.f32.xlu0 %v421_v22  ;;  %v492_v22 = vsel %vm76_vm0, %v470_v12, 0.0 }
  0x8d   :  { %v94_v29 = vpop.xlane.xlu2 %93 }
  0x8e   :  { %v88_v30 = vpop.xlane.xlu1 %87  ;;  %v82_v31 = vpop.xlane.xlu0 %81  ;;  %v120_v41 = vperm.slane %v94_v29, %v112_v26 }
  0x8f   :  { %v117_v35 = vperm.slane %v88_v30, %v112_v26  ;;  %v113_v36 = vperm.slane %v82_v31, %v112_v26 }
  0x90   :  { %v121_v49 = vsel %vm114_vm1, %v120_v41, %v119_v40 }
  0x91   :  { %v118_v43 = vsel %vm114_vm1, %v117_v35, %v116_v34  ;;  %v115_v44 = vsel %vm114_vm1, %v113_v36, %v111_v39  ;;  %v532_v34 = vmul.f32 %v526_v25, %v62_v60 }
  0x92   :  { %478 = vadd.xlane.f32.xlu2 %v477_v37  ;;  %v126_v50 = vsel %vm125_vm2, %v118_v43, %v115_v44 }
  0x93   :  { %475 = vadd.xlane.f32.xlu1 %v474_v32  ;;  %472 = vadd.xlane.f32.xlu0 %v471_v38  ;;  %v128_v61 = vsel %vm127_vm3, %v121_v49, %v126_v50  ;;  %v533_v32 = vmul.f32 %v526_v25, %v830_v59  ;;  %v548_v44 = vsel %vm76_vm0, %v532_v34, 0.0 }
  0x95   :  { %v820_v48 = vpop.xlane.xlu2 %147  ;;  %v551_v41 = vsel %vm76_vm0, %v533_v32, 0.0 }
  0x96   :  { %v100_v47 = vpop.xlane.xlu1 %99  ;;  %v97_v52 = vpop.xlane.xlu0 %96  ;;  %v179_v20 = vperm.slane %v820_v48, %v178_v14 }
  0x97   :  { %v123_v51 = vperm.slane %v100_v47, %v112_v26  ;;  %v122_v54 = vperm.slane %v97_v52, %v802_v24  ;;  %v527_v26 = vperm.slane %v728_v17, 7  ;;  %v245_v52 = vadd.s32 4294967256, %v802_v24 }
  0x99   :  { %v124_v62 = vsel %vm114_vm1, %v123_v51, %v122_v54  ;;  %v534_v33 = vmul.f32 %v527_v26, %v62_v60  ;;  %v535_v48 = vmul.f32 %v527_v26, %v830_v59  ;;  %v243_v51 = vadd.s32 4294967264, %v802_v24 }
  0x9a   :  { %v130_v63 = vsel %vm129_vm4, %v124_v62, %v128_v61  ;;  %487 = vadd.xlane.f32.xlu2 %v486_v55  ;;  %vm522_vm1 = vcmask 913152  }
  0x9b   :  { %484 = vadd.xlane.f32.xlu1 %v483_v53  ;;  %133 = vst.msk [vmem:[#allocation7] sm:$0xf] %vm132_vm5, %v130_v63  ;;  %481 = vadd.xlane.f32.xlu0 %v480_v58  ;;  %v554_v42 = vsel %vm76_vm0, %v534_v33, 0.0  ;;  %v557_v54 = vsel %vm76_vm0, %v535_v48, 0.0  ;;  %vm507_vm0 = vcmask 917312   ;;  %vm572_vm5 = vcmask 1048512  }
  0x9d   :  { %v157_v4 = vpop.xlane.xlu2 %156 }
  0x9e   :  { %v154_v3 = vpop.xlane.xlu1 %153  ;;  %v151_v6 = vpop.xlane.xlu0 %150  ;;  %v185_v28 = vperm.slane %v157_v4, %v180_v15 }
  0x9f   :  { %v184_v27 = vperm.slane %v154_v3, %v178_v14  ;;  %v181_v29 = vperm.slane %v151_v6, %v180_v15 }
  0xa1   :  { %v186_v0 = vsel %vm182_vm6, %v185_v28, %v184_v27  ;;  %v183_v17 = vsel %vm182_vm6, %v181_v29, %v179_v20 }
  0xa2   :  { %543 = vadd.xlane.f32.xlu2 %v542_v8  ;;  %v193_v43 = vsel %vm125_vm2, %v186_v0, %v183_v17 }
  0xa3   :  { %540 = vadd.xlane.f32.xlu1 %v539_v7  ;;  %537 = vadd.xlane.f32.xlu0 %v536_v10 }
  0xa5   :  { %v166_v18 = vpop.xlane.xlu2 %165 }
  0xa6   :  { %v163_v16 = vpop.xlane.xlu1 %162  ;;  %v160_v19 = vpop.xlane.xlu0 %159  ;;  %v190_v35 = vperm.slane %v166_v18, %v178_v14 }
  0xa7   :  { %v188_v30 = vperm.slane %v163_v16, %v180_v15  ;;  %v187_v31 = vperm.slane %v160_v19, %v178_v14  ;;  %v308_v14 = vadd.s32 4294967248, %v802_v24 }
  0xa9   :  { %v189_v38 = vsel %vm182_vm6, %v188_v30, %v187_v31 }
  0xaa   :  { %493 = vadd.xlane.f32.xlu2 %v492_v22  ;;  %v194_v45 = vsel %vm127_vm3, %v189_v38, %v193_v43 }
  0xab   :  { %490 = vadd.xlane.f32.xlu1 %v489_v21  ;;  %546 = vadd.xlane.f32.xlu0 %v545_v23 }
  0xad   :  { %v216_v37 = vpop.xlane.xlu2 %215 }
  0xae   :  { %v213_v36 = vpop.xlane.xlu1 %212  ;;  %v169_v39 = vpop.xlane.xlu0 %168  ;;  %v246_v56 = vperm.slane %v216_v37, %v245_v52 }
  0xaf   :  { %v191_v40 = vperm.slane %v169_v39, %v180_v15  ;;  %v244_v55 = vperm.slane %v213_v36, %v243_v51  ;;  %v373_v39 = vadd.s32 4294967232, %v802_v24 }
  0xb1   :  { %v192_v46 = vsel %vm182_vm6, %v191_v40, %v190_v35  ;;  %v248_v63 = vsel %vm247_vm8, %v246_v56, %v244_v55  ;;  %v375_v40 = vadd.s32 4294967224, %v802_v24  ;;  %vm587_vm6 = vcmask 1044352  }
  0xb2   :  { %v195_v47 = vsel %vm129_vm4, %v192_v46, %v194_v45  ;;  %555 = vadd.xlane.f32.xlu2 %v554_v42 }
  0xb3   :  { %552 = vadd.xlane.f32.xlu1 %v551_v41  ;;  %198 = vst.msk [vmem:[#allocation7] sm:$0xf] %vm197_vm7, %v195_v47  ;;  %549 = vadd.xlane.f32.xlu0 %v548_v44 }
  0xb5   :  { %v225_v50 = vpop.xlane.xlu2 %224 }
  0xb6   :  { %v222_v49 = vpop.xlane.xlu1 %221  ;;  %v219_v53 = vpop.xlane.xlu0 %218  ;;  %v252_v60 = vperm.slane %v225_v50, %v243_v51 }
  0xb7   :  { %v250_v57 = vperm.slane %v222_v49, %v245_v52  ;;  %v249_v58 = vperm.slane %v219_v53, %v243_v51 }
  0xb9   :  { %v251_v59 = vsel %vm247_vm8, %v250_v57, %v249_v58 }
  0xba   :  { %v258_v6 = vsel %vm125_vm2, %v251_v59, %v248_v63 }
  0xbb   :  { %558 = vadd.xlane.f32.xlu0 %v557_v54 }
  0xbd   :  { %v234_v62 = vpop.xlane.xlu2 %233 }
  0xbe   :  { %v231_v61 = vpop.xlane.xlu1 %230  ;;  %v256_v1 = vperm.slane %v234_v62, %v245_v52  ;;  %v228_v2 = vpop.xlane.xlu0 %227 }
  0xbf   :  { %v255_v5 = vperm.slane %v231_v61, %v243_v51  ;;  %v253_v3 = vperm.slane %v228_v2, %v245_v52 }
  0xc1   :  { %v257_v4 = vsel %vm247_vm8, %v256_v1, %v255_v5  ;;  %v254_v7 = vsel %vm247_vm8, %v253_v3, %v252_v60  ;;  %v438_v5 = vadd.s32 4294967216, %v802_v24  ;;  %v440_v1 = vadd.s32 4294967208, %v802_v24 }
  0xc2   :  { %v259_v8 = vsel %vm127_vm3, %v254_v7, %v258_v6 }
  0xc3   :  { %v260_v9 = vsel %vm129_vm4, %v257_v4, %v259_v8 }
  0xc4   :  { %263 = vst.msk [vmem:[#allocation7] sm:$0xf] %vm262_vm9, %v260_v9 }
  0xc5   :  { %v284_v11 = vpop.xlane.xlu2 %283 }
  0xc6   :  { %v281_v10 = vpop.xlane.xlu1 %280  ;;  %v278_v12 = vpop.xlane.xlu0 %277  ;;  %v314_v19 = vperm.slane %v284_v11, %v308_v14 }
  0xc7   :  { %v311_v22 = vperm.slane %v281_v10, %v310_v13  ;;  %v309_v25 = vperm.slane %v278_v12, %v308_v14 }
  0xc9   :  { %v313_v27 = vsel %vm312_vm10, %v311_v22, %v309_v25 }
  0xcd   :  { %v293_v16 = vpop.xlane.xlu2 %292 }
  0xce   :  { %v290_v15 = vpop.xlane.xlu1 %289  ;;  %v287_v18 = vpop.xlane.xlu0 %286  ;;  %v318_v23 = vperm.slane %v293_v16, %v310_v13 }
  0xcf   :  { %v315_v21 = vperm.slane %v287_v18, %v310_v13  ;;  %v317_v26 = vperm.slane %v290_v15, %v308_v14 }
  0xd1   :  { %v316_v20 = vsel %vm312_vm10, %v315_v21, %v314_v19  ;;  %v319_v30 = vsel %vm312_vm10, %v318_v23, %v317_v26 }
  0xd2   :  { %v323_v31 = vsel %vm125_vm2, %v316_v20, %v313_v27 }
  0xd3   :  { %v324_v0 = vsel %vm127_vm3, %v319_v30, %v323_v31  ;;  %v505_v30 = vadd.s32 4294967192, %v802_v24  ;;  %v503_v31 = vadd.s32 4294967200, %v802_v24 }
  0xd5   :  { %v343_v29 = vpop.xlane.xlu2 %342 }
  0xd6   :  { %v299_v28 = vpop.xlane.xlu1 %298  ;;  %v296_v33 = vpop.xlane.xlu0 %295  ;;  %v374_v44 = vperm.slane %v343_v29, %v373_v39 }
  0xd7   :  { %v321_v32 = vperm.slane %v299_v28, %v310_v13  ;;  %v320_v34 = vperm.slane %v296_v33, %v308_v14 }
  0xd9   :  { %v322_v17 = vsel %vm312_vm10, %v321_v32, %v320_v34 }
  0xda   :  { %v325_v35 = vsel %vm129_vm4, %v322_v17, %v324_v0 }
  0xdb   :  { %328 = vst.msk [vmem:[#allocation7] sm:$0xf] %vm327_vm11, %v325_v35 }
  0xdd   :  { %v352_v37 = vpop.xlane.xlu2 %351 }
  0xde   :  { %v349_v36 = vpop.xlane.xlu1 %348  ;;  %v346_v38 = vpop.xlane.xlu0 %345  ;;  %v380_v46 = vperm.slane %v352_v37, %v375_v40 }
  0xdf   :  { %v379_v45 = vperm.slane %v349_v36, %v373_v39  ;;  %v376_v47 = vperm.slane %v346_v38, %v375_v40 }
  0xe1   :  { %v381_v50 = vsel %vm377_vm12, %v380_v46, %v379_v45  ;;  %v378_v51 = vsel %vm377_vm12, %v376_v47, %v374_v44 }
  0xe2   :  { %v388_v58 = vsel %vm125_vm2, %v381_v50, %v378_v51 }
  0xe5   :  { %v361_v42 = vpop.xlane.xlu2 %360 }
  0xe6   :  { %v358_v41 = vpop.xlane.xlu1 %357  ;;  %v355_v43 = vpop.xlane.xlu0 %354  ;;  %v385_v52 = vperm.slane %v361_v42, %v373_v39 }
  0xe7   :  { %v383_v48 = vperm.slane %v358_v41, %v375_v40  ;;  %v382_v49 = vperm.slane %v355_v43, %v373_v39 }
  0xe9   :  { %v384_v55 = vsel %vm377_vm12, %v383_v48, %v382_v49 }
  0xea   :  { %v389_v60 = vsel %vm127_vm3, %v384_v55, %v388_v58 }
  0xed   :  { %v411_v54 = vpop.xlane.xlu2 %410 }
  0xee   :  { %v408_v53 = vpop.xlane.xlu1 %407  ;;  %v364_v56 = vpop.xlane.xlu0 %363  ;;  %v441_v4 = vperm.slane %v411_v54, %v440_v1 }
  0xef   :  { %v386_v57 = vperm.slane %v364_v56, %v375_v40  ;;  %v439_v3 = vperm.slane %v408_v53, %v438_v5  ;;  %v568_v53 = vadd.s32 4294967184, %v802_v24 }
  0xf1   :  { %v387_v61 = vsel %vm377_vm12, %v386_v57, %v385_v52  ;;  %v443_v11 = vsel %vm442_vm14, %v441_v4, %v439_v3  ;;  %v570_v52 = vadd.s32 4294967176, %v802_v24 }
  0xf2   :  { %v390_v62 = vsel %vm129_vm4, %v387_v61, %v389_v60 }
  0xf3   :  { %393 = vst.msk [vmem:[#allocation7] sm:$0xf] %vm392_vm13, %v390_v62 }
  0xf5   :  { %v420_v59 = vpop.xlane.xlu2 %419 }
  0xf6   :  { %v417_v63 = vpop.xlane.xlu1 %416  ;;  %v414_v2 = vpop.xlane.xlu0 %413  ;;  %v447_v8 = vperm.slane %v420_v59, %v438_v5 }
  0xf7   :  { %v445_v6 = vperm.slane %v417_v63, %v440_v1  ;;  %v444_v7 = vperm.slane %v414_v2, %v438_v5 }
  0xf9   :  { %v446_v12 = vsel %vm442_vm14, %v445_v6, %v444_v7 }
  0xfa   :  { %v453_v19 = vsel %vm125_vm2, %v446_v12, %v443_v11 }
  0xfd   :  { %v429_v10 = vpop.xlane.xlu2 %428 }
  0xfe   :  { %v426_v9 = vpop.xlane.xlu1 %425  ;;  %v451_v14 = vperm.slane %v429_v10, %v440_v1  ;;  %v423_v15 = vpop.xlane.xlu0 %422 }
  0xff   :  { %v450_v13 = vperm.slane %v426_v9, %v438_v5  ;;  %v448_v16 = vperm.slane %v423_v15, %v440_v1 }
 0x101   :  { %v452_v18 = vsel %vm442_vm14, %v451_v14, %v450_v13  ;;  %v449_v21 = vsel %vm442_vm14, %v448_v16, %v447_v8 }
 0x102   :  { %v454_v22 = vsel %vm127_vm3, %v449_v21, %v453_v19 }
 0x103   :  { %v455_v25 = vsel %vm129_vm4, %v452_v18, %v454_v22 }
 0x104   :  { %458 = vst.msk [vmem:[#allocation7] sm:$0xf] %vm457_vm15, %v455_v25 }
 0x105   :  { %v479_v23 = vpop.xlane.xlu2 %478 }
 0x106   :  { %v476_v26 = vpop.xlane.xlu1 %475  ;;  %v473_v20 = vpop.xlane.xlu0 %472  ;;  %v509_v34 = vperm.slane %v479_v23, %v503_v31 }
 0x107   :  { %v506_v35 = vperm.slane %v476_v26, %v505_v30  ;;  %v504_v36 = vperm.slane %v473_v20, %v503_v31 }
 0x109   :  { %v508_v40 = vsel %vm507_vm0, %v506_v35, %v504_v36 }
 0x10d   :  { %v488_v28 = vpop.xlane.xlu2 %487 }
 0x10e   :  { %v485_v27 = vpop.xlane.xlu1 %484  ;;  %v482_v29 = vpop.xlane.xlu0 %481  ;;  %v513_v38 = vperm.slane %v488_v28, %v505_v30 }
 0x10f   :  { %v510_v0 = vperm.slane %v482_v29, %v505_v30  ;;  %v512_v37 = vperm.slane %v485_v27, %v503_v31 }
 0x111   :  { %v511_v39 = vsel %vm507_vm0, %v510_v0, %v509_v34  ;;  %v514_v41 = vsel %vm507_vm0, %v513_v38, %v512_v37 }
 0x112   :  { %v518_v42 = vsel %vm125_vm2, %v511_v39, %v508_v40 }
 0x113   :  { %v519_v49 = vsel %vm127_vm3, %v514_v41, %v518_v42 }
 0x115   :  { %v544_v33 = vpop.xlane.xlu2 %543 }
 0x116   :  { %v541_v32 = vpop.xlane.xlu1 %540  ;;  %v538_v17 = vpop.xlane.xlu0 %537  ;;  %v574_v55 = vperm.slane %v544_v33, %v568_v53 }
 0x117   :  { %v571_v61 = vperm.slane %v541_v32, %v570_v52  ;;  %v569_v62 = vperm.slane %v538_v17, %v568_v53 }
 0x119   :  { %v573_v24 = vsel %vm572_vm5, %v571_v61, %v569_v62 }
 0x11d   :  { %v494_v44 = vpop.xlane.xlu2 %493 }
 0x11e   :  { %v491_v43 = vpop.xlane.xlu1 %490  ;;  %v516_v46 = vperm.slane %v494_v44, %v505_v30  ;;  %v547_v47 = vpop.xlane.xlu0 %546 }
 0x11f   :  { %v515_v45 = vperm.slane %v491_v43, %v503_v31  ;;  %v575_v56 = vperm.slane %v547_v47, %v570_v52 }
 0x121   :  { %v517_v48 = vsel %vm507_vm0, %v516_v46, %v515_v45  ;;  %v576_v63 = vsel %vm572_vm5, %v575_v56, %v574_v55 }
 0x122   :  { %v520_v50 = vsel %vm129_vm4, %v517_v48, %v519_v49  ;;  %v583_v3 = vsel %vm125_vm2, %v576_v63, %v573_v24 }
 0x123   :  { %523 = vst.msk [vmem:[#allocation7] sm:$0xf] %vm522_vm1, %v520_v50 }
 0x125   :  { %v556_v60 = vpop.xlane.xlu2 %555 }
 0x126   :  { %v550_v51 = vpop.xlane.xlu0 %549  ;;  %v553_v54 = vpop.xlane.xlu1 %552  ;;  %v580_v59 = vperm.slane %v556_v60, %v568_v53 }
 0x127   :  { %v578_v57 = vperm.slane %v553_v54, %v570_v52  ;;  %v577_v58 = vperm.slane %v550_v51, %v568_v53 }
 0x129   :  { %v579_v5 = vsel %vm572_vm5, %v578_v57, %v577_v58 }
 0x12a   :  { %v584_v4 = vsel %vm127_vm3, %v579_v5, %v583_v3 }
 0x12e   :  { %v559_v1 = vpop.xlane.xlu0 %558 }
 0x12f   :  { %v581_v2 = vperm.slane %v559_v1, %v570_v52 }
 0x131   :  { %v582_v6 = vsel %vm572_vm5, %v581_v2, %v580_v59 }
 0x132   :  { %v585_v7 = vsel %vm129_vm4, %v582_v6, %v584_v4 }
 0x133   :  { %588 = vst.msk [vmem:[#allocation7] sm:$0xf] %vm587_vm6, %v585_v7 }
 0x134   :  { %599 = dma.vmem_to_hbm [thread:$0]  %s595_s1, 64, %s597_s23, [#allocation4]  }
 0x135   :  { %688 = dma.done.wait [#allocation4], 64  }
 0x136   :  { %689 = vsyncadd [#allocation4], 4294967232 }
 0x137   :  { %604 = vsyncpa [#allocation3], 1 }
 0x138   :  { %605 = vsyncpa [#allocation6], 1 }
 0x139   :  { %606 = vsyncpa [#allocation4], 1 }

</bundles_post_ra>
